<compile_context>
chip_gen: v6e
topology: v6e:2x2x1
jax: 0.10.0
libtpu: 0.0.40
codegen_flags: <defaults>
</compile_context>

<pallas_src>
import functools

import jax
import jax.numpy as jnp
from jax.experimental import pallas as pl
from jax.experimental.pallas import tpu as pltpu


# ---------------------------------------------------------------------------
# Kernel bodies.  Shared by the flat [M, N] path and the fused [B, H, S, 3*hd]
# path: leading size-1 block dims are flattened away with free reshapes.
# ---------------------------------------------------------------------------
def _matmul_bias_kernel(x_ref, w_ref, b_ref, o_ref, *, compute_dtype):
    """Whole-K tile: one MXU pass, f32 accumulation, bias added in f32."""
    a = x_ref[...].reshape(x_ref.shape[-2], x_ref.shape[-1]).astype(compute_dtype)
    acc = jnp.dot(a, w_ref[...], preferred_element_type=jnp.float32)
    y = (acc + b_ref[...]).astype(o_ref.dtype)
    o_ref[...] = y.reshape(o_ref.shape)


def _matmul_bias_acc_kernel(x_ref, w_ref, b_ref, o_ref, acc_ref, *,
                            compute_dtype, k_axis):
    """K-tiled path: f32 VMEM accumulator, bias only in the final-K epilogue."""
    k = pl.program_id(k_axis)

    @pl.when(k == 0)
    def _():
        acc_ref[...] = jnp.zeros_like(acc_ref)

    a = x_ref[...].reshape(x_ref.shape[-2], x_ref.shape[-1]).astype(compute_dtype)
    acc_ref[...] += jnp.dot(a, w_ref[...], preferred_element_type=jnp.float32)

    @pl.when(k == pl.num_programs(k_axis) - 1)
    def _():
        y = (acc_ref[...] + b_ref[...]).astype(o_ref.dtype)
        o_ref[...] = y.reshape(o_ref.shape)


# ---------------------------------------------------------------------------
# Tile selection.
# ---------------------------------------------------------------------------
def _vmem_budget_bytes():
    """Per-generation VMEM budget: ~70% of physical per-core VMEM, capped.
    v5e/v6e (128 MiB) -> 80 MiB, v7x (64 MiB) -> ~45 MiB."""
    try:
        cap = int(pltpu.get_tpu_info().vmem_capacity_bytes)
    except Exception:
        cap = 64 * 1024 * 1024  # conservative default (v7x per-core VMEM)
    return max(32 * 1024 * 1024, min(int(cap * 0.7), 80 * 1024 * 1024))


def _round_up(v, m):
    return ((v + m - 1) // m) * m


def _select_tiles(M, K, N, x_bytes, w_bytes, out_bytes, budget, *, tn_fixed=None):
    """Pick (tm, tk, tn, k_tiled).  Prefer a whole-K schedule (weight streamed
    from HBM exactly once); fall back to a K-tiled f32-accumulator schedule only
    when the whole-K working set cannot fit the per-generation VMEM budget."""

    def footprint(tm, tk, tn, with_acc):
        f = (2 * tm * tk * x_bytes        # double-buffered x tile
             + 2 * tk * tn * w_bytes      # double-buffered weight tile
             + 2 * tm * tn * out_bytes    # double-buffered output tile
             + 2 * tn * 4)                # bias tile (f32)
        if with_acc:
            f += tm * tn * 4              # f32 accumulator scratch
        return f

    if tn_fixed is not None:
        tn = tn_fixed
    elif N <= 1024:
        tn = N                            # single output panel per row block
    else:
        tn = 512                          # 256-aligned for v6e/v7x 256x256 MXU

    tm_full = M if M <= 1024 else 512
    tm_cands = [tm_full] + [t for t in (512, 256, 128) if t < tm_full]

    # 1) whole-K: weight streamed from HBM exactly once.
    for tm in tm_cands:
        if footprint(tm, K, tn, with_acc=False) <= budget:
            return tm, K, tn, False

    # 2) K-tiled fallback with the largest tiles that fit the budget.
    for tk in (2048, 1024, 512, 256):
        if tk >= K:
            continue
        for tm in tm_cands:
            if footprint(tm, tk, tn, with_acc=True) <= budget:
                return tm, tk, tn, True

    # 3) last-resort small tiles (always fits in practice).
    return min(tm_full, 256), min(K, 512), min(tn, 512), True


# ---------------------------------------------------------------------------
# Wrapper.
# ---------------------------------------------------------------------------
def qkv_projection(x, weight, bias, num_heads, *,
                   compute_dtype=jnp.bfloat16, out_dtype=None,
                   weight_is_kn=False):
    """Pallas equivalent of QKVProjection.forward.

    x:      [B, S, d_in]   (any float dtype; cast to compute_dtype inside the kernel)
    weight: [3*d_out, d_in] (PyTorch nn.Linear layout) or [d_in, 3*d_out] if
            weight_is_kn=True (pre-transposed at parameter-load time).
    bias:   [3*d_out]
    returns (q, k, v), each [B, num_heads, S, d_out // num_heads]
    """
    B, S, K = x.shape
    if weight_is_kn:
        assert weight.shape[0] == K
        N = weight.shape[1]
        w_kn = weight.astype(compute_dtype)
    else:
        N = weight.shape[0]
        assert weight.shape[1] == K
        # One-time [N, K] -> [K, N] re-layout + bf16 cast so the kernel's dot is a
        # plain [M,K]x[K,N] MXU contraction (no per-tile XLU transpose).
        # TODO(synk): in a real model do this once at parameter-load time, not per forward.
        w_kn = weight.T.astype(compute_dtype)

    out_dtype = x.dtype if out_dtype is None else jnp.dtype(out_dtype)
    hd3 = N // num_heads            # per-head q|k|v width (3 * head_dim)
    hd = hd3 // 3                   # head_dim
    assert hd3 * num_heads == N and hd * 3 == hd3

    b2d = bias.astype(jnp.float32).reshape(1, N)

    budget = _vmem_budget_bytes()
    x_bytes = x.dtype.itemsize
    w_bytes = jnp.dtype(compute_dtype).itemsize
    o_bytes = jnp.dtype(out_dtype).itemsize

    M = B * S
    flops = 2 * M * K * N

    # Fused-output path: write [B, H, S, 3*head_dim] straight from the kernel so
    # the PyTorch reshape/permute becomes a free view and the q/k/v chunk is a
    # plain slice.  Needs the per-head panel to be 128-lane aligned.
    fused = (hd3 % 128 == 0)

    if fused:
        ts, tk, _, k_tiled = _select_tiles(S, K, N, x_bytes, w_bytes, o_bytes,
                                           budget, tn_fixed=hd3)
        ns = pl.cdiv(S, ts)
        # v7x megacore: make sure both TensorCores get parallel blocks.
        if num_heads * B * ns == 1 and S >= 16:
            ts = max(8, _round_up((S + 1) // 2, 8))
            ns = pl.cdiv(S, ts)

        out_shape = jax.ShapeDtypeStruct((B, num_heads, S, hd3), out_dtype)

        if not k_tiled:
            grid = (num_heads, B, ns)   # h outermost: weight panel DMA'd once per head
            kernel = functools.partial(_matmul_bias_kernel, compute_dtype=compute_dtype)
            in_specs = [
                pl.BlockSpec((1, ts, K), lambda h, b, s: (b, s, 0)),   # x    [B, S, K]
                pl.BlockSpec((K, hd3), lambda h, b, s: (0, h)),        # w    [K, N]
                pl.BlockSpec((1, hd3), lambda h, b, s: (0, h)),        # bias [1, N]
            ]
            out_specs = pl.BlockSpec((1, 1, ts, hd3), lambda h, b, s: (b, h, s, 0))
            scratch = []
            dim_sem = ("parallel", "parallel", "parallel")
            x_reads, w_reads = num_heads, 1
        else:
            nk = pl.cdiv(K, tk)
            grid = (num_heads, B, ns, nk)
            kernel = functools.partial(_matmul_bias_acc_kernel,
                                       compute_dtype=compute_dtype, k_axis=3)
            in_specs = [
                pl.BlockSpec((1, ts, tk), lambda h, b, s, k: (b, s, k)),
                pl.BlockSpec((tk, hd3), lambda h, b, s, k: (k, h)),
                pl.BlockSpec((1, hd3), lambda h, b, s, k: (0, h)),
            ]
            out_specs = pl.BlockSpec((1, 1, ts, hd3), lambda h, b, s, k: (b, h, s, 0))
            scratch = [pltpu.VMEM((ts, hd3), jnp.float32)]
            dim_sem = ("parallel", "parallel", "parallel", "arbitrary")
            x_reads, w_reads = num_heads, B * ns

        cost = pl.CostEstimate(
            flops=flops, transcendentals=0,
            bytes_accessed=int(M * K * x_bytes * x_reads
                               + K * N * w_bytes * w_reads
                               + N * 4 + M * N * o_bytes))

        qkv = pl.pallas_call(
            kernel,
            out_shape=out_shape,
            grid_spec=pltpu.PrefetchScalarGridSpec(
                num_scalar_prefetch=0, grid=grid,
                in_specs=in_specs, out_specs=out_specs,
                scratch_shapes=scratch),
            compiler_params=pltpu.CompilerParams(
                dimension_semantics=dim_sem, vmem_limit_bytes=budget),
            cost_estimate=cost,
        )(x, w_kn, b2d)
        # chunk(3, dim=-1) is a plain last-dim slice of the already-permuted output.
        return qkv[..., :hd], qkv[..., hd:2 * hd], qkv[..., 2 * hd:]

    # ---- flat path (arbitrary head_dim): [M, N] matmul + XLA permute glue ----
    x2d = x.reshape(M, K)   # NOTE: no dtype cast here — cast happens in-kernel on the VPU
    tm, tk, tn, k_tiled = _select_tiles(M, K, N, x_bytes, w_bytes, o_bytes, budget)
    nj = pl.cdiv(N, tn)
    ni = pl.cdiv(M, tm)
    # v7x megacore: ensure >= 2 parallel blocks for small shapes.
    if nj * ni == 1 and M >= 16:
        tm = max(8, _round_up((M + 1) // 2, 8))
        ni = pl.cdiv(M, tm)

    out_shape = jax.ShapeDtypeStruct((M, N), out_dtype)

    if not k_tiled:
        grid = (nj, ni)      # j outermost: weight panel DMA'd from HBM exactly once
        kernel = functools.partial(_matmul_bias_kernel, compute_dtype=compute_dtype)
        in_specs = [
            pl.BlockSpec((tm, K), lambda j, i: (i, 0)),     # x    [M, K]
            pl.BlockSpec((K, tn), lambda j, i: (0, j)),     # w    [K, N]
            pl.BlockSpec((1, tn), lambda j, i: (0, j)),     # bias [1, N]
        ]
        out_specs = pl.BlockSpec((tm, tn), lambda j, i: (i, j))
        scratch = []
        dim_sem = ("parallel", "parallel")
        x_reads, w_reads = nj, 1
    else:
        nk = pl.cdiv(K, tk)
        grid = (nj, ni, nk)
        kernel = functools.partial(_matmul_bias_acc_kernel,
                                   compute_dtype=compute_dtype, k_axis=2)
        in_specs = [
            pl.BlockSpec((tm, tk), lambda j, i, k: (i, k)),
            pl.BlockSpec((tk, tn), lambda j, i, k: (k, j)),
            pl.BlockSpec((1, tn), lambda j, i, k: (0, j)),
        ]
        out_specs = pl.BlockSpec((tm, tn), lambda j, i, k: (i, j))
        scratch = [pltpu.VMEM((tm, tn), jnp.float32)]
        dim_sem = ("parallel", "parallel", "arbitrary")
        x_reads, w_reads = nj, ni

    cost = pl.CostEstimate(
        flops=flops, transcendentals=0,
        bytes_accessed=int(M * K * x_bytes * x_reads
                           + K * N * w_bytes * w_reads
                           + N * 4 + M * N * o_bytes))

    out2d = pl.pallas_call(
        kernel,
        out_shape=out_shape,
        grid_spec=pltpu.PrefetchScalarGridSpec(
            num_scalar_prefetch=0, grid=grid,
            in_specs=in_specs, out_specs=out_specs,
            scratch_shapes=scratch),
        compiler_params=pltpu.CompilerParams(
            dimension_semantics=dim_sem, vmem_limit_bytes=budget),
        cost_estimate=cost,
    )(x2d, w_kn, b2d)

    # Glue mirroring .reshape(B,S,H,-1).permute(0,2,1,3).chunk(3,-1).
    # Used only when 3*head_dim is not 128-lane aligned; otherwise the fused path
    # above writes the permuted layout directly from the kernel.
    qkv = out2d.reshape(B, S, num_heads, hd3)
    qkv = jnp.transpose(qkv, (0, 2, 1, 3))
    return qkv[..., :hd], qkv[..., hd:2 * hd], qkv[..., 2 * hd:]


if __name__ == "__main__":
    key = jax.random.PRNGKey(0)
    keys = jax.random.split(key, 6)

    def run_case(B, S, d_in, d_out, num_heads, kx, kw, kb):
        x = jax.random.normal(kx, (B, S, d_in), dtype=jnp.float32)
        # nn.Linear(d_in, 3*d_out): weight [3*d_out, d_in], bias [3*d_out]
        weight = jax.random.normal(kw, (3 * d_out, d_in), dtype=jnp.float32) * 0.02
        bias = jax.random.normal(kb, (3 * d_out,), dtype=jnp.float32) * 0.01

        q, k, v = qkv_projection(x, weight, bias, num_heads)
        jax.block_until_ready((q, k, v))

        # Pure-JAX f32 reference of the exact PyTorch forward semantics.  The
        # kernel uses bf16 MXU operands with f32 accumulation, so tolerances are
        # loosened accordingly.
        ref = x @ weight.T + bias
        ref = ref.reshape(B, S, num_heads, -1).transpose(0, 2, 1, 3)
        hd = ref.shape[-1] // 3
        rq, rk, rv = ref[..., :hd], ref[..., hd:2 * hd], ref[..., 2 * hd:]

        assert q.shape == (B, num_heads, S, d_out // num_heads), q.shape
        assert k.shape == q.shape and v.shape == q.shape
        assert jnp.allclose(q, rq, atol=3e-2, rtol=3e-2)
        assert jnp.allclose(k, rk, atol=3e-2, rtol=3e-2)
        assert jnp.allclose(v, rv, atol=3e-2, rtol=3e-2)

    # Small demo shape (head_dim=12 -> flat matmul + XLA permute glue path).
    run_case(2, 8, 32, 48, 4, *keys[:3])
    # Lane-aligned shape (head_dim=128 -> fused [B, H, S, 3*hd] output path).
    run_case(2, 16, 256, 256, 2, *keys[3:])

    print("KERNEL_OK")
</pallas_src>

<mosaic_0001>
module attributes {stable_mosaic.version = 11 : i64} {
  func.func @_matmul_bias_kernel(%arg0: i32, %arg1: i32, %arg2: memref<8x32xf32, #tpu.memory_space<vmem>>, %arg3: memref<32x144xbf16, #tpu.memory_space<vmem>>, %arg4: memref<1x144xf32, #tpu.memory_space<vmem>>, %arg5: memref<8x144xf32, #tpu.memory_space<vmem>>) attributes {dimension_semantics = [#tpu.dimension_semantics<parallel>, #tpu.dimension_semantics<parallel>], iteration_bounds = array<i64: 1, 2>, scalar_prefetch = 0 : i64, scratch_operands = 0 : i64, tpu.core_type = #tpu.core_type<tc>, window_params = [{transform_indices = @transform_0, window_bounds = array<i64: 8, 32>}, {transform_indices = @transform_1, window_bounds = array<i64: 32, 144>}, {transform_indices = @transform_2, window_bounds = array<i64: 1, 144>}, {transform_indices = @transform_3, window_bounds = array<i64: 8, 144>}]} {
    %c0 = arith.constant 0 : index
    %c0_0 = arith.constant 0 : index
    %0 = vector.load %arg2[%c0, %c0_0] : memref<8x32xf32, #tpu.memory_space<vmem>>, vector<8x32xf32>
    %1 = arith.truncf %0 : vector<8x32xf32> to vector<8x32xbf16>
    %c0_1 = arith.constant 0 : index
    %c0_2 = arith.constant 0 : index
    %2 = vector.load %arg3[%c0_1, %c0_2] : memref<32x144xbf16, #tpu.memory_space<vmem>>, vector<32x144xbf16>
    %cst = arith.constant dense<0.000000e+00> : vector<8x144xf32>
    %3 = tpu.matmul %1, %2, %cst {dimension_numbers = #tpu.dot_dimension_numbers<[1], [0], [0], [1], [0, 0, 1, 1], [], []>} : vector<8x32xbf16>, vector<32x144xbf16>, vector<8x144xf32> -> vector<8x144xf32>
    %c0_3 = arith.constant 0 : index
    %c0_4 = arith.constant 0 : index
    %4 = vector.load %arg4[%c0_3, %c0_4] : memref<1x144xf32, #tpu.memory_space<vmem>>, vector<1x144xf32>
    %5 = vector.broadcast %4 : vector<1x144xf32> to vector<8x144xf32>
    %6 = arith.addf %3, %5 : vector<8x144xf32>
    %c0_5 = arith.constant 0 : index
    %c0_6 = arith.constant 0 : index
    %7 = vector.load %arg5[%c0_5, %c0_6] : memref<8x144xf32, #tpu.memory_space<vmem>>, vector<8x144xf32>
    tpu.vector_store %arg5[%c0_5, %c0_6], %6 {strides = array<i32>} : memref<8x144xf32, #tpu.memory_space<vmem>>, vector<8x144xf32>,
    return
  }
  func.func @transform_0(%arg0: i32, %arg1: i32) -> (i32, i32) {
    %c0_i32 = arith.constant 0 : i32
    %c0_i32_0 = arith.constant 0 : i32
    return %arg1, %c0_i32 : i32, i32
  }
  func.func @transform_1(%arg0: i32, %arg1: i32) -> (i32, i32) {
    %c0_i32 = arith.constant 0 : i32
    %c0_i32_0 = arith.constant 0 : i32
    return %c0_i32, %arg0 : i32, i32
  }
  func.func @transform_2(%arg0: i32, %arg1: i32) -> (i32, i32) {
    %c0_i32 = arith.constant 0 : i32
    %c0_i32_0 = arith.constant 0 : i32
    return %c0_i32, %arg0 : i32, i32
  }
  func.func @transform_3(%arg0: i32, %arg1: i32) -> (i32, i32) {
    %c0_i32 = arith.constant 0 : i32
    return %arg1, %arg0 : i32, i32
  }
}

</mosaic_0001>

<bundles_post_ra>
// kernel: tpu_custom_call.1
= control target key start
LH: loop header
LB: loop body
LE: loop exit
PB: predicated region body
PF: predicated region fallthrough
CT: control target
= control target key end

     0   :  { %8 = vsyncpa [#allocation3], 0  ;;  %s907_s0 = inlined_call_operand.hbm [shape: f32[16,32], index: 0, kind: input, shape index: {}]   ;;  %s908_s1 = inlined_call_operand.hbm [shape: bf16[32,144], index: 1, kind: input, shape index: {}]   ;;  %s909_s2 = inlined_call_operand.vmem [shape: f32[1,144], index: 2, kind: input, shape index: {}]   ;;  %s910_s3 = inlined_call_operand.hbm [shape: f32[16,144], index: 3, kind: output, shape index: {}]  }
   0x1   :  { %10 = vsyncpa [#allocation3 + $0x1], 0 }
   0x2   :  { %11 = vsyncpa [#allocation6], 0 }
   0x3   :  { %12 = vsyncpa [#allocation4], 0 }
   0x4   :  { %14 = vsyncpa [#allocation4 + $0x1], 0  ;;  %s724_s12 = smov 0   ;;  %s726_s13 = smov 0  }
   0x5   :  { %s728_s14 = smov 0   ;;  %s730_s15 = smov 0  }
   0x6   :  { %s732_s16 = smov 0   ;;  %s734_s17 = smov 0  }
   0x7 LB: > { %s453_s18 = sadd.s32 4294967295, %s696_s17   ;;  %s454_s19 = sadd.s32 4294967294, %s696_s17   ;;  %s696_s17 = sphi %s734_s17, %s20_s17   ;;  %s692_s16 = sphi %s732_s16, %s928_s16   ;;  %s688_s15 = sphi %s730_s15, %s927_s15   ;;  %s684_s14 = sphi %s728_s14, %s926_s14   ;;  %s680_s13 = sphi %s726_s13, %s925_s13   ;;  %s676_s12 = sphi %s724_s12, %s924_s12  }
   0x8   : > { %p52_p0 = scmp.ne.s32.totalorder %s680_s13, %s676_s12  ;;  %p758_p1 = scmp.eq.s32.totalorder %s453_s18, 0 }
   0x9   : > { %p762_p2 = scmp.eq.s32.totalorder %s453_s18, 1  ;;  %p136_p3 = scmp.eq.s32.totalorder %s454_s19, 1 }
   0xa   : > { %p768_p4 = por %p758_p1, %p52_p0  ;;  %p455_p5 = scmp.ge.s32.totalorder %s696_s17, 1 }
   0xb   : > { %p773_p6 = por %p136_p3, %p52_p0  ;;  %p143_p7 = scmp.lt.s32.totalorder %s696_s17, 3 }
   0xc   : > { %s914_s22 = scalar_select %p768_p4, 1, 0 }
   0xd   : > { %s915_s23 = scalar_select %p773_p6, 1, 0 }
   0xe   : > { %p778_p8 = pnand %p455_p5, %p143_p7  ;;  %s698_s25 = smov [#allocation5]  }
   0xf   : > { %s158_s26 = sshll.u32 %s698_s25, 4  ;;  %s29_s28 = sadd.s32 1, %s692_s16  ;;  %s159_s26 = int_to_ptr.vmem [resolvable:$true] %s158_s26 }
  0x10   : > { %p484_p9 = pneg %p778_p8  ;;  %s569_s29 = scalar_lea.vmem %s159_s26, 512 }
  0x11   : > { %p570_p13 = scmp.ne.s32.totalorder %s159_s26, %s569_s29  ;;  %p577_p5 = scmp.lt.s32.totalorder %s159_s26, %s159_s26 }
  0x12   : > { %p787_p11 = pnand %p484_p9, %p758_p1  ;;  %p578_p7 = scmp.lt.s32.totalorder %s569_s29, %s569_s29 }
  0x14   : > { %p560_p12 = pneg %p787_p11  ;;  %p579_p6 = por %p578_p7, %p577_p5 }
  0x16   : > { %p572_p0 = pnand %p570_p13, %p560_p12 }
  0x18   : > { %p573_p3 = pneg %p572_p0 }
  0x1a   : > { %p580_p4 = pnand %p579_p6, %p573_p3 }
  0x1c   : > { %583 = shalt.err (!%p580_p4)
}
  0x1d   : > { %s699_s30 = smov 128   ;;  %s700_s4 = smov 8  }
  0x1e   : > { %487 = dma.hbm_to_vmem [thread:$0]  (!%p787_p11), %s908_s1, 512, %s159_s26, [#allocation6], %s699_s30, %s699_s30, %s700_s4  }
  0x1f   : > { %p30_p6 = scmp.ge.s32.totalorder %s29_s28, 2  ;;  %s39_s7 = sadd.s32 1, %s684_s14 }
  0x20   : > { %p46_p4 = scmp.ne.s32.totalorder %s684_s14, %s680_s13  ;;  %p47_p9 = scmp.eq.s32.totalorder %s696_s17, 0 }
  0x21   : > { %s930_s28 = smov (%p30_p6, %s29_s28), 0  ;;  %p497_p0 = scmp.lt.s32.totalorder %s696_s17, 2 }
  0x22   : > { %p805_p12 = por %p47_p9, %p46_p4  ;;  %p811_p13 = por %p762_p2, %p46_p4 }
  0x23   : > { %s36_s10 = ssub.s32 %s692_s16, %s930_s28  ;;  %s180_s11 = sand.u32 1, %s684_s14  }
  0x24   : > { %p37_p11 = scmp.eq.s32.totalorder %s36_s10, 0  ;;  %s459_s18 = sshll.u32 %s180_s11, 3 }
  0x25   : > { %s460_s25 = sshll.u32 %s692_s16, 7  ;;  %s184_s30 = scalar_lea.vmem [#allocation2], %s459_s18 }
  0x26   : > { %s820_s19 = scalar_select %p37_p11, %s684_s14, %s39_s7  }
  0x27   : > { %s189_s29 = scalar_lea.hbm %s907_s0, %s460_s25  ;;  %s191_s4 = sshll.u32 %s184_s30, 4  ;;  %s192_s4 = int_to_ptr.vmem [resolvable:$true] %s191_s4 }
  0x28   : > { %p828_p2 = pnand %p497_p0, %p805_p12  ;;  %s181_s5 = scalar_lea.sflag [#allocation3], %s180_s11 }
  0x29   : > { %s597_s6 = scalar_lea.vmem %s192_s4, 128  ;;  %s701_s7 = smov [#allocation2]  }
  0x2a   : > { %p586_p3 = pneg %p828_p2  ;;  %p598_p5 = scmp.ne.s32.totalorder %s192_s4, %s597_s6 }
  0x2b   : > { %s602_s10 = sshll.u32 %s701_s7, 4  ;;  %s603_s10 = int_to_ptr.vmem [resolvable:$false] %s602_s10 }
  0x2c   : > { %p600_p7 = pnand %p598_p5, %p586_p3  ;;  %s604_s25 = scalar_lea.vmem %s603_s10, 256 }
  0x2d   : > { %p605_p4 = scmp.lt.s32.totalorder %s192_s4, %s603_s10  ;;  %p606_p9 = scmp.lt.s32.totalorder %s604_s25, %s597_s6 }
  0x2e   : > { %p601_p6 = pneg %p600_p7 }
  0x2f   : > { %p607_p11 = por %p606_p9, %p605_p4 }
  0x31   : > { %p608_p10 = pnand %p607_p11, %p601_p6 }
  0x33   : > { %611 = shalt.err (!%p608_p10)
}
  0x34   : > { %491 = dma.hbm_to_vmem [thread:$0]  (!%p828_p2), %s189_s29, 128, %s192_s4, %s181_s5  }
  0x35   : > { %200 = sbr.rel (%p778_p8) target bundleno = 281 (0x119), region = 32  ;;  %s839_s8 = sand.u32 (!%p778_p8), 1, %s680_s13  }
  0x36   : > { %s462_s11 = sshll.u32 (!%p778_p8), %s839_s8, 3  ;;  %s203_s18 = scalar_lea.sflag (!%p778_p8), [#allocation3], %s839_s8 }
  0x37   : > { %s206_s26 = scalar_lea.vmem (!%p778_p8), [#allocation2], %s462_s11  ;;  %p921_p12 = scmp.ne.s32.totalorder (!%p778_p8), %s914_s22, 0 }
  0x3a   : > { %663 = dma.done.wait (%p921_p12), %s203_s18, 128  }
  0x3b   : > { %665 = vsyncadd (%p921_p12), %s203_s18, 4294967168 }
  0x3c   : > { %667 = dma.done.wait (%p758_p1), [#allocation6], 512  }
  0x3d   : > { %669 = vsyncadd (%p758_p1), [#allocation6], 4294966784  ;;  %v702_v0 = vmov 0   ;;  %v552_v1 = vld [vmem:[#allocation5 + $0x14] ss:$8 sps:$4 sm:$0xff]   ;;  %vm283_vm0 = vcmask 261120   ;;  %v253_v7 = vlaneseq }
  0x3e   : > { %319 = vmatprep.mubr.bf16.mxu0 %v702_v0  ;;  %v554_v2 = vld [vmem:[#allocation5 + $0x10] ss:$8 sps:$4 sm:$0xff]   ;;  %299 = vmatprep.subr.bf16.mxu0 %v552_v1  ;;  %v555_v3 = vld [vmem:[#allocation5 + $0x4] ss:$8 sps:$4 sm:$0xff]   ;;  %v557_v4 = vld [vmem:[#allocation5] ss:$8 sps:$4 sm:$0xff]  }
  0x3f   : > { %300 = vmatpush1.bf16.msra.mxu0 %v554_v2  ;;  %v245_v5 = vld [vmem:[%s206_s26] sm:$0xff]  ;;  %v254_v8 = vshrl.u32 %v253_v7, 7  ;;  %s464_s20 = sshll.u32 %s839_s8, 4  ;;  %s475_s27 = sshll.u32 %s688_s15, 8  ;;  %vm329_vm1 = vcmask 130048  }
  0x40   : > { %301 = vmatprep.subr.bf16.mxu0 %v555_v3  ;;  %v246_v6 = vpack.c.bf16 %v245_v5, %v245_v5  ;;  %v251_v10 = vld [vmem:[%s909_s2] sm:$0x3]  ;;  %s236_s29 = scalar_lea.vmem [#allocation7], %s464_s20  ;;  %s859_s5 = scalar_lea.hbm %s910_s3, %s475_s27 }
  0x41   : > { %v255_v9 = vsub.s32 0, %v254_v8  ;;  %v259_v11 = vsub.s32 1, %v254_v8  ;;  %s348_s30 = sshll.u32 %s236_s29, 4  ;;  %s332_s15 = scalar_lea.sflag [#allocation4], %s839_s8  ;;  %s861_s30 = int_to_ptr.vmem [resolvable:$true] %s348_s30 }
  0x42   : > { %s612_s6 = scalar_lea.vmem %s861_s30, 256  ;;  %s703_s7 = smov [#allocation7]  }
  0x43   : > { %302 = vmatpush1.bf16.msra.mxu0 %v557_v4  ;;  %v256_v12 = vrot.slane %v251_v10, %v255_v9  ;;  %v260_v13 = vrot.slane %v251_v10, %v259_v11  ;;  %p613_p1 = scmp.ne.s32.totalorder %s861_s30, %s612_s6  ;;  %s616_s10 = sshll.u32 %s703_s7, 4  ;;  %s617_s10 = int_to_ptr.vmem [resolvable:$false] %s616_s10 }
  0x44   : > { %s618_s25 = scalar_lea.vmem %s617_s10, 512  ;;  %p619_p0 = scmp.lt.s32.totalorder %s861_s30, %s617_s10 }
  0x45   : > { %p614_p8 = pnand %p613_p1, %p811_p13  ;;  %p620_p2 = scmp.lt.s32.totalorder %s618_s25, %s612_s6 }
  0x46   : > { %469 = vmatmul.mubr.msk.bf16.vlgmr.msra.gmra.mxu0 %vm283_vm0, %v246_v6 }
  0x47   : > { %p615_p10 = pneg %p614_p8  ;;  %p621_p3 = por %p620_p2, %p619_p0 }
  0x49   : > { %p622_p5 = pnand %p621_p3, %p615_p10 }
 0x106   : > { %v321_v14 = vpop.f32.mrf.mxu0 }
 0x107   : > { %v322_v15 = vadd.f32 %v321_v14, %v256_v12 }
 0x108   : > { %v323_v16 = vpop.f32.mrf.mxu0 }
 0x109   : > { %328 = vst [vmem:[%s236_s29] sm:$0xff] %v322_v15  ;;  %v324_v17 = vadd.f32 %v323_v16, %v260_v13 }
 0x10a   : > { %v325_v18 = vpop.f32.mrf.mxu0 }
 0x10b   : > { %330 = vst.msk [vmem:[%s236_s29 + $0x8] sm:$0xff] %vm329_vm1, %v324_v17 }
 0x10c   : > { %v326_v19 = vpop.f32.mrf.mxu0 }
 0x10d   : > { %625 = shalt.err (!%p622_p5)
}
 0x10e   : > { %s626_s11 = scalar_lea.hbm %s859_s5, 256  ;;  %s630_s26 = scalar_lea.hbm %s910_s3, 512 }
 0x10f   : > { %p627_p7 = scmp.ne.s32.totalorder %s859_s5, %s626_s11  ;;  %p631_p9 = scmp.lt.s32.totalorder %s859_s5, %s910_s3 }
 0x110   : > { %p632_p11 = scmp.lt.s32.totalorder %s630_s26, %s626_s11 }
 0x111   : > { %p628_p6 = pnand %p627_p7, %p811_p13 }
 0x112   : > { %p633_p12 = por %p632_p11, %p631_p9 }
 0x113   : > { %p629_p4 = pneg %p628_p6 }
 0x115   : > { %p634_p1 = pnand %p633_p12, %p629_p4 }
 0x117   : > { %637 = shalt.err (!%p634_p1)
}
 0x118   : > { %482 = dma.vmem_to_hbm [thread:$0]  (%p811_p13), %s861_s30, 256, %s859_s5, %s332_s15  }
 0x119 PF: > { %s360_s24 = sand.u32 1, %s676_s12   ;;  %p922_p8 = scmp.ne.s32.totalorder %s915_s23, 0 }
 0x11a   : > { %p923_p10 = scmp.ge.s32.totalorder %s696_s17, 2  ;;  %s361_s27 = scalar_lea.sflag [#allocation4], %s360_s24 }
 0x11c   : > { %p493_p0 = pnand %p923_p10, %p922_p8 }
 0x11e   : > { %p494_p2 = pneg %p493_p0 }
 0x120   : > { %671 = dma.done.wait (%p494_p2), %s361_s27, 256  }
 0x121   : > { %673 = vsyncadd (%p494_p2), %s361_s27, 4294967040  ;;  %s20_s17 = sadd.s32 1, %s696_s17   ;;  %s924_s12 = smov %s680_s13 }
 0x122   : > { %p17_p3 = scmp.ge.s32.totalorder %s20_s17, 4   ;;  %s925_s13 = smov %s684_s14 }
 0x123   : > { %s926_s14 = smov %s820_s19  ;;  %s927_s15 = smov %s692_s16 }
 0x124   : > { %s928_s16 = smov %s930_s28  ;;  %19 = sbr.rel (!%p17_p3) target bundleno = 7 (0x7), region = 85 }
 0x129   :  { %366 = vsyncpa [#allocation3], 1 }
 0x12a   :  { %368 = vsyncpa [#allocation3 + $0x1], 1 }
 0x12b   :  { %369 = vsyncpa [#allocation6], 1 }
 0x12c   :  { %370 = vsyncpa [#allocation4], 1 }
 0x12d   :  { %372 = vsyncpa [#allocation4 + $0x1], 1 }

</bundles_post_ra>
